<compile_context>
chip_gen: v5e
topology: v5e:2x2
jax: 0.10.0
libtpu: 0.0.40
codegen_flags: <defaults>
</compile_context>

<pallas_src>
import jax
import jax.numpy as jnp
from jax.experimental import pallas as pl
from jax.experimental.pallas import tpu as pltpu


def _round_up(x: int, m: int) -> int:
    return (x + m - 1) // m * m


def decoder_kernel(x_ref, w1_ref, b1_ref, w2_ref, b2_ref, o_ref):
    # Linear 1: bf16 operands on the MXU, f32 accumulation.
    h = jnp.dot(x_ref[...], w1_ref[...], preferred_element_type=jnp.float32)
    # Bias + ReLU in f32 on the VPU (b1 is (1, enc_out) -> broadcast over rows).
    h = jnp.maximum(h + b1_ref[...], 0.0)
    # Linear 2 against the current N tile of w2 (bf16 operands, f32 accumulation).
    y = jnp.dot(h.astype(w2_ref.dtype), w2_ref[...],
                preferred_element_type=jnp.float32)
    y = y + b2_ref[...]
    # sigmoid(y) = 1 / (1 + exp(-y)); exp and approx-reciprocal both use the EUP slot.
    o_ref[...] = pl.reciprocal(1.0 + jnp.exp(-y), approx=True).astype(o_ref.dtype)


def prepare_params(params, compute_dtype=jnp.bfloat16):
    """One-time weight prep, hoisted out of the per-call path.

    Returns (w1 bf16, b1 f32 (1,E), w2 bf16, b2 f32 (1,N)).
    """
    w1, b1, w2, b2 = params
    return (
        jnp.asarray(w1, compute_dtype),
        jnp.asarray(b1, jnp.float32).reshape(1, -1),
        jnp.asarray(w2, compute_dtype),
        jnp.asarray(b2, jnp.float32).reshape(1, -1),
    )


def _pick_tile_n(input_dim: int, grid_b: int) -> int:
    """Pick an output-column tile: multiple of 128 dividing input_dim (or the full dim)."""
    if input_dim % 128 != 0:
        # Single full-width block; the tail lanes are handled by masked stores.
        return input_dim
    n128 = input_dim // 128
    divs = [d for d in range(1, n128 + 1) if n128 % d == 0]
    capped = [d for d in divs if d * 128 <= 2048] or [min(divs)]
    best = max(capped)
    # If the batch grid alone can't feed two TensorCores (v7x), split N at least in two.
    if grid_b < 2 and n128 >= 2:
        halves = [d for d in divs if d <= n128 // 2 and d * 128 <= 2048]
        if halves:
            best = max(halves)
    return best * 128


def decoder_forward(x, prepared_params, dims, *, tile_b: int = 512,
                    out_dtype=jnp.float32):
    """x: (B, latent_dim) float32 -> (B, C, W, H) `out_dtype` (default float32)."""
    channels, width, height = dims
    w1, b1, w2, b2 = prepared_params

    B, latent_dim = x.shape
    enc_out_dim = w1.shape[1]
    input_dim = w2.shape[1]
    assert input_dim == channels * width * height

    compute_dtype = w1.dtype
    w_bpe = jnp.dtype(compute_dtype).itemsize
    out_bpe = jnp.dtype(out_dtype).itemsize

    # ---- Batch tiling: multiple of 16 (bf16 sublane packing) ----------------
    tile_b_eff = max(16, min(_round_up(tile_b, 16), _round_up(B, 16)))
    B_pad = _round_up(B, tile_b_eff)
    grid_b = B_pad // tile_b_eff

    # ---- Output-column tiling ------------------------------------------------
    tile_n = _pick_tile_n(input_dim, grid_b)

    # ---- Per-generation VMEM budget -------------------------------------------
    try:
        vmem_cap = int(pltpu.get_tpu_info().vmem_capacity_bytes)
    except Exception:
        vmem_cap = 128 * 1024 * 1024
    budget = min(int(vmem_cap * 0.75), 100 * 1024 * 1024)

    def vmem_need(tb, tn):
        return (
            2 * tb * latent_dim * w_bpe            # x tiles (double-buffered)
            + 2 * latent_dim * enc_out_dim * w_bpe  # w1 (pinned; count 2 conservatively)
            + 2 * enc_out_dim * tn * w_bpe          # w2 tiles
            + 2 * (enc_out_dim + tn) * 4            # biases (f32)
            + 2 * tb * tn * out_bpe                 # out tiles (double-buffered)
            + tb * (enc_out_dim + tn) * 4           # f32 intermediates h, y
        )

    # Shrink tiles until they fit the budget: N tile first (keeps batch blocks big),
    # then the batch tile.
    while vmem_need(tile_b_eff, tile_n) > budget:
        new_tn = None
        if input_dim % 128 == 0 and tile_n > 128:
            for cand in range(tile_n // 128 - 1, 0, -1):
                if input_dim % (cand * 128) == 0:
                    new_tn = cand * 128
                    break
        if new_tn is not None and new_tn < tile_n:
            tile_n = new_tn
            continue
        if tile_b_eff > 16:
            tile_b_eff = max(16, _round_up(tile_b_eff // 2, 16))
            continue
        break

    B_pad = _round_up(B, tile_b_eff)
    grid_b = B_pad // tile_b_eff
    grid_n = input_dim // tile_n

    # Per-call input prep (only x; weights were prepared once outside).
    x_c = x.astype(compute_dtype)
    if B_pad != B:
        x_c = jnp.pad(x_c, ((0, B_pad - B), (0, 0)))

    vmem_limit = int(min(budget,
                         max(int(1.25 * vmem_need(tile_b_eff, tile_n)),
                             8 * 1024 * 1024)))

    cost = pl.CostEstimate(
        flops=2 * B_pad * (grid_n * latent_dim * enc_out_dim
                           + enc_out_dim * input_dim),
        transcendentals=2 * B_pad * input_dim,       # exp + reciprocal
        bytes_accessed=(grid_n * B_pad * latent_dim * w_bpe
                        + latent_dim * enc_out_dim * w_bpe
                        + enc_out_dim * input_dim * w_bpe
                        + (enc_out_dim + input_dim) * 4
                        + B_pad * input_dim * out_bpe),
    )

    out = pl.pallas_call(
        decoder_kernel,
        out_shape=jax.ShapeDtypeStruct((B_pad, input_dim), out_dtype),
        grid=(grid_b, grid_n),
        in_specs=[
            pl.BlockSpec((tile_b_eff, latent_dim), lambda i, j: (i, 0)),   # x tile
            pl.BlockSpec((latent_dim, enc_out_dim), lambda i, j: (0, 0)),  # w1 pinned
            pl.BlockSpec((1, enc_out_dim), lambda i, j: (0, 0)),           # b1 pinned
            pl.BlockSpec((enc_out_dim, tile_n), lambda i, j: (0, j)),      # w2 N tile
            pl.BlockSpec((1, tile_n), lambda i, j: (0, j)),                # b2 N tile
        ],
        out_specs=pl.BlockSpec((tile_b_eff, tile_n), lambda i, j: (i, j)),
        compiler_params=pltpu.CompilerParams(
            dimension_semantics=("parallel", "parallel"),
            vmem_limit_bytes=vmem_limit,
        ),
        cost_estimate=cost,
    )(x_c, w1, b1, w2, b2)

    # Only padded batch rows (if any) need stripping; no column strip pass anymore.
    if B_pad != B:
        out = out[:B]
    # Reshape exactly like torch's .reshape(B, C, W, H) (free on contiguous layout).
    return out.reshape(B, channels, width, height)


def init_params(key, latent_dim, enc_out_dim, input_dim):
    """Deterministic synthetic init (uniform, roughly matching torch Linear scale)."""
    k1, k2, k3, k4 = jax.random.split(key, 4)
    lim1 = 1.0 / jnp.sqrt(latent_dim)
    lim2 = 1.0 / jnp.sqrt(enc_out_dim)
    w1 = jax.random.uniform(k1, (latent_dim, enc_out_dim), jnp.float32, -lim1, lim1)
    b1 = jax.random.uniform(k2, (enc_out_dim,), jnp.float32, -lim1, lim1)
    w2 = jax.random.uniform(k3, (enc_out_dim, input_dim), jnp.float32, -lim2, lim2)
    b2 = jax.random.uniform(k4, (input_dim,), jnp.float32, -lim2, lim2)
    return w1, b1, w2, b2


if __name__ == "__main__":
    # Small shapes consistent with the module: dims=(C,W,H), latent_dim, enc_out_dim.
    dims = (1, 16, 16)            # channels, width, height -> input_dim = 256
    latent_dim = 32
    enc_out_dim = 64
    batch = 2                     # tiny demo batch; kernel pays off at B >= ~128

    channels, width, height = dims
    input_dim = channels * width * height

    key = jax.random.PRNGKey(0)
    kx, kp = jax.random.split(key)
    x = jax.random.normal(kx, (batch, latent_dim), jnp.float32)
    params = init_params(kp, latent_dim, enc_out_dim, input_dim)

    # Weight prep is done ONCE (outside the per-call path).
    prepped = prepare_params(params)

    out = decoder_forward(x, prepped, dims)
    out = jax.block_until_ready(out)

    # Reference check in plain JAX with the same bf16-operand / f32-accumulate math
    # (kernel uses an approximate EUP reciprocal in the sigmoid -> slightly loose tol).
    w1, b1, w2, b2 = params
    xb = x.astype(jnp.bfloat16)
    w1b = w1.astype(jnp.bfloat16)
    w2b = w2.astype(jnp.bfloat16)
    h_ref = jnp.maximum(
        jnp.dot(xb, w1b, preferred_element_type=jnp.float32) + b1, 0.0)
    y_ref = jax.nn.sigmoid(
        jnp.dot(h_ref.astype(jnp.bfloat16), w2b,
                preferred_element_type=jnp.float32) + b2)
    y_ref = y_ref.reshape(batch, channels, width, height)

    assert out.shape == (batch, channels, width, height)
    assert jnp.allclose(out, y_ref, atol=2e-3), "mismatch vs bf16-matched reference"

    # Also sanity-check against the full-f32 module semantics (loose tol for bf16).
    h32 = jnp.maximum(x @ w1 + b1, 0.0)
    y32 = jax.nn.sigmoid(h32 @ w2 + b2).reshape(batch, channels, width, height)
    assert jnp.allclose(out, y32, atol=3e-2), "mismatch vs f32 reference"

    print("KERNEL_OK")
</pallas_src>

<mosaic_0001>
module attributes {stable_mosaic.version = 11 : i64} {
  func.func @decoder_kernel(%arg0: i32, %arg1: i32, %arg2: memref<16x32xbf16, #tpu.memory_space<vmem>>, %arg3: memref<32x64xbf16, #tpu.memory_space<vmem>>, %arg4: memref<1x64xf32, #tpu.memory_space<vmem>>, %arg5: memref<64x128xbf16, #tpu.memory_space<vmem>>, %arg6: memref<1x128xf32, #tpu.memory_space<vmem>>, %arg7: memref<16x128xf32, #tpu.memory_space<vmem>>) attributes {dimension_semantics = [#tpu.dimension_semantics<parallel>, #tpu.dimension_semantics<parallel>], iteration_bounds = array<i64: 1, 2>, scalar_prefetch = 0 : i64, scratch_operands = 0 : i64, tpu.core_type = #tpu.core_type<tc>, window_params = [{transform_indices = @transform_0, window_bounds = array<i64: 16, 32>}, {pipeline_mode = #tpu.pipeline_mode<synchronous>, transform_indices = @transform_1, window_bounds = array<i64: 32, 64>}, {pipeline_mode = #tpu.pipeline_mode<synchronous>, transform_indices = @transform_2, window_bounds = array<i64: 1, 64>}, {transform_indices = @transform_3, window_bounds = array<i64: 64, 128>}, {transform_indices = @transform_4, window_bounds = array<i64: 1, 128>}, {transform_indices = @transform_5, window_bounds = array<i64: 16, 128>}]} {
    %c0 = arith.constant 0 : index
    %c0_0 = arith.constant 0 : index
    %0 = vector.load %arg2[%c0, %c0_0] : memref<16x32xbf16, #tpu.memory_space<vmem>>, vector<16x32xbf16>
    %c0_1 = arith.constant 0 : index
    %c0_2 = arith.constant 0 : index
    %1 = vector.load %arg3[%c0_1, %c0_2] : memref<32x64xbf16, #tpu.memory_space<vmem>>, vector<32x64xbf16>
    %cst = arith.constant dense<0.000000e+00> : vector<16x64xf32>
    %2 = tpu.matmul %0, %1, %cst {dimension_numbers = #tpu.dot_dimension_numbers<[1], [0], [0], [1], [0, 0, 1, 1], [], []>} : vector<16x32xbf16>, vector<32x64xbf16>, vector<16x64xf32> -> vector<16x64xf32>
    %c0_3 = arith.constant 0 : index
    %c0_4 = arith.constant 0 : index
    %3 = vector.load %arg4[%c0_3, %c0_4] : memref<1x64xf32, #tpu.memory_space<vmem>>, vector<1x64xf32>
    %4 = vector.broadcast %3 : vector<1x64xf32> to vector<16x64xf32>
    %5 = arith.addf %2, %4 : vector<16x64xf32>
    %cst_5 = arith.constant 0.000000e+00 : f32
    %6 = vector.broadcast %cst_5 : f32 to vector<16x64xf32>
    %7 = arith.maximumf %5, %6 : vector<16x64xf32>
    %8 = arith.truncf %7 : vector<16x64xf32> to vector<16x64xbf16>
    %c0_6 = arith.constant 0 : index
    %c0_7 = arith.constant 0 : index
    %9 = vector.load %arg5[%c0_6, %c0_7] : memref<64x128xbf16, #tpu.memory_space<vmem>>, vector<64x128xbf16>
    %cst_8 = arith.constant dense<0.000000e+00> : vector<16x128xf32>
    %10 = tpu.matmul %8, %9, %cst_8 {dimension_numbers = #tpu.dot_dimension_numbers<[1], [0], [0], [1], [0, 0, 1, 1], [], []>} : vector<16x64xbf16>, vector<64x128xbf16>, vector<16x128xf32> -> vector<16x128xf32>
    %c0_9 = arith.constant 0 : index
    %c0_10 = arith.constant 0 : index
    %11 = vector.load %arg6[%c0_9, %c0_10] : memref<1x128xf32, #tpu.memory_space<vmem>>, vector<1x128xf32>
    %12 = vector.broadcast %11 : vector<1x128xf32> to vector<16x128xf32>
    %13 = arith.addf %10, %12 : vector<16x128xf32>
    %cst_11 = arith.constant 0.000000e+00 : f32
    %14 = vector.broadcast %cst_11 : f32 to vector<16x128xf32>
    %15 = arith.subf %14, %13 : vector<16x128xf32>
    %16 = math.exp %15 : vector<16x128xf32>
    %cst_12 = arith.constant 1.000000e+00 : f32
    %17 = vector.broadcast %cst_12 : f32 to vector<16x128xf32>
    %18 = arith.addf %17, %16 : vector<16x128xf32>
    %19 = tpu.reciprocal %18 {approx = true} : vector<16x128xf32> -> vector<16x128xf32>
    %c0_13 = arith.constant 0 : index
    %c0_14 = arith.constant 0 : index
    %20 = vector.load %arg7[%c0_13, %c0_14] : memref<16x128xf32, #tpu.memory_space<vmem>>, vector<16x128xf32>
    tpu.vector_store %arg7[%c0_13, %c0_14], %19 {strides = array<i32>} : memref<16x128xf32, #tpu.memory_space<vmem>>, vector<16x128xf32>,
    return
  }
  func.func @transform_0(%arg0: i32, %arg1: i32) -> (i32, i32) {
    %c0_i32 = arith.constant 0 : i32
    %c0_i32_0 = arith.constant 0 : i32
    return %arg0, %c0_i32 : i32, i32
  }
  func.func @transform_1(%arg0: i32, %arg1: i32) -> (i32, i32) {
    %c0_i32 = arith.constant 0 : i32
    %c0_i32_0 = arith.constant 0 : i32
    %c0_i32_1 = arith.constant 0 : i32
    return %c0_i32, %c0_i32_0 : i32, i32
  }
  func.func @transform_2(%arg0: i32, %arg1: i32) -> (i32, i32) {
    %c0_i32 = arith.constant 0 : i32
    %c0_i32_0 = arith.constant 0 : i32
    %c0_i32_1 = arith.constant 0 : i32
    return %c0_i32, %c0_i32_0 : i32, i32
  }
  func.func @transform_3(%arg0: i32, %arg1: i32) -> (i32, i32) {
    %c0_i32 = arith.constant 0 : i32
    %c0_i32_0 = arith.constant 0 : i32
    return %c0_i32, %arg1 : i32, i32
  }
  func.func @transform_4(%arg0: i32, %arg1: i32) -> (i32, i32) {
    %c0_i32 = arith.constant 0 : i32
    %c0_i32_0 = arith.constant 0 : i32
    return %c0_i32, %arg1 : i32, i32
  }
  func.func @transform_5(%arg0: i32, %arg1: i32) -> (i32, i32) {
    %c0_i32 = arith.constant 0 : i32
    return %arg0, %arg1 : i32, i32
  }
}

</mosaic_0001>

<bundles_post_ra>
// kernel: tpu_custom_call.1
= control target key start
LH: loop header
LB: loop body
LE: loop exit
PB: predicated region body
PF: predicated region fallthrough
CT: control target
= control target key end

     0   :  { %s1106_s0 = inlined_call_operand.hbm [shape: bf16[16,32], index: 0, kind: input, shape index: {}]   ;;  %s1107_s1 = inlined_call_operand.hbm [shape: bf16[32,64], index: 1, kind: input, shape index: {}]   ;;  %s1108_s2 = inlined_call_operand.vmem [shape: f32[1,64], index: 2, kind: input, shape index: {}]   ;;  %s1109_s3 = inlined_call_operand.hbm [shape: bf16[64,256], index: 3, kind: input, shape index: {}]   ;;  %s1110_s4 = inlined_call_operand.vmem [shape: f32[1,256], index: 4, kind: input, shape index: {}]   ;;  %s1111_s5 = inlined_call_operand.hbm [shape: f32[16,256], index: 5, kind: output, shape index: {}]  }
   0x1   :  { %1118 = sst [smem:[#allocation16_spill]] %s1106_s0 }
   0x2   :  { %1119 = sst [smem:[#allocation17_spill]] %s1107_s1 }
   0x3   :  { %10 = vsyncpa [#allocation3], 0 }
   0x4   :  { %11 = vsyncpa [#allocation6], 0 }
   0x5   :  { %12 = vsyncpa [#allocation4], 0 }
   0x6   :  { %14 = vsyncpa [#allocation4 + $0x1], 0  ;;  %s932_s18 = smov 0   ;;  %s934_s19 = smov 0  }
   0x7   :  { %s936_s20 = smov 0   ;;  %s938_s21 = smov 0  }
   0x8   :  { %s940_s22 = smov 0   ;;  %s942_s23 = smov 0  }
   0x9 LB: > { %1120 = sst [smem:[#allocation13_spill]] %s872_s18  ;;  %s963_s24 = sadd.s32 4294967295, %s892_s23   ;;  %s892_s23 = sphi %s942_s23, %s20_s23   ;;  %s888_s22 = sphi %s940_s22, %s1140_s22   ;;  %s884_s21 = sphi %s938_s21, %s1139_s21   ;;  %s880_s20 = sphi %s936_s20, %s1138_s20   ;;  %s876_s19 = sphi %s934_s19, %s1137_s19   ;;  %s872_s18 = sphi %s932_s18, %s1136_s18  }
   0xa   : > { %1121 = sst [smem:[#allocation14_spill]] %s892_s23  ;;  %s560_s25 = sadd.s32 4294967294, %s892_s23  }
   0xb   : > { %p114_p0 = scmp.ne.s32.totalorder %s880_s20, %s876_s19  ;;  %p115_p1 = scmp.eq.s32.totalorder %s892_s23, 0 }
   0xc   : > { %p120_p2 = scmp.ne.s32.totalorder %s876_s19, %s872_s18  ;;  %p121_p3 = scmp.eq.s32.totalorder %s963_s24, 0 }
   0xd   : > { %p972_p4 = por %p115_p1, %p114_p0  ;;  %p172_p5 = scmp.eq.s32.totalorder %s963_s24, 1 }
   0xe   : > { %p979_p6 = por %p121_p3, %p120_p2  ;;  %p178_p7 = scmp.eq.s32.totalorder %s560_s25, 1 }
   0xf   : > { %p983_p8 = por %p172_p5, %p114_p0  ;;  %p561_p9 = scmp.ge.s32.totalorder %s892_s23, 1 }
  0x10   : > { %p988_p10 = por %p178_p7, %p120_p2  ;;  %p185_p11 = scmp.lt.s32.totalorder %s892_s23, 3 }
  0x11   : > { %s1127_s0 = sld [smem:[#allocation16_spill]]  ;;  %s894_s9 = smov [#allocation2]  }
  0x12   : > { %s1125_s29 = scalar_select %p988_p10, 1, 0 }
  0x13   : > { %p996_p12 = pnand %p561_p9, %p185_p11  ;;  %s201_s10 = sshll.u32 %s894_s9, 4  ;;  %s202_s10 = int_to_ptr.vmem [resolvable:$true] %s201_s10 }
  0x14   : > { %1126 = sst [smem:[#allocation15_spill]] %s1125_s29  ;;  %p564_p1 = scmp.ge.s32.totalorder %s892_s23, 2 }
  0x15   : > { %p625_p13 = pneg %p996_p12  ;;  %p642_p2 = scmp.lt.s32.totalorder %s892_s23, 2 }
  0x16   : > { %s1129_s1 = sld [smem:[#allocation17_spill]]  ;;  %s1112_s14 = smov 64  }
  0x17   : > { %s199_s7 = sshll.u32 %s1127_s0, 4  ;;  %p626_p0 = pnand %p625_p13, %p121_p3  ;;  %s200_s7 = int_to_ptr.hbm [resolvable:$true] %s199_s7 }
  0x18   : > { %s1113_s15 = smov 4   ;;  %p1014_p5 = pnand %p642_p2, %p972_p4 }
  0x19   : > { %628 = dma.hbm_to_vmem [thread:$0]  (!%p626_p0), %s200_s7, 128, %s202_s10, [#allocation3], %s1112_s14, %s1112_s14, %s1113_s15  }
  0x1a   : > { %s897_s17 = smov [#allocation5]   ;;  %s107_s30 = sadd.s32 1, %s880_s20 }
  0x1b   : > { %s215_s25 = sshll.u32 %s897_s17, 4  ;;  %s29_s6 = sadd.s32 1, %s888_s22  ;;  %s216_s25 = int_to_ptr.vmem [resolvable:$true] %s215_s25 }
  0x1c   : > { %s213_s13 = sshll.u32 %s1129_s1, 4  ;;  %s232_s9 = sand.u32 1, %s892_s23   ;;  %s214_s13 = int_to_ptr.hbm [resolvable:$true] %s213_s13 }
  0x1d   : > { %631 = dma.hbm_to_vmem [thread:$0]  (!%p626_p0), %s214_s13, 256, %s216_s25, [#allocation6], %s1112_s14, %s1112_s14, %s1113_s15  }
  0x1e   : > { %p30_p7 = scmp.ge.s32.totalorder %s29_s6, 2  ;;  %s234_s11 = sand.u32 1, %s880_s20  }
  0x1f   : > { %s566_s7 = sshll.u32 %s888_s22, 2  ;;  %s565_s26 = sshll.u32 %s234_s11, 5 }
  0x20   : > { %s1142_s6 = smov (%p30_p7, %s29_s6), 0  ;;  %s240_s17 = scalar_lea.hbm %s1109_s3, %s566_s7 }
  0x21   : > { %s104_s0 = ssub.s32 %s888_s22, %s1142_s6  ;;  %s241_s1 = sshll.u32 %s240_s17, 4  ;;  %s242_s1 = int_to_ptr.hbm [resolvable:$true] %s241_s1 }
  0x22   : > { %p105_p4 = scmp.eq.s32.totalorder %s104_s0, 0  ;;  %s236_s13 = scalar_lea.vmem [#allocation7], %s565_s26 }
  0x23   : > { %s243_s25 = sshll.u32 %s236_s13, 4  ;;  %s233_s15 = scalar_lea.sflag [#allocation3], %s232_s9  ;;  %s244_s25 = int_to_ptr.vmem [resolvable:$true] %s243_s25 }
  0x24   : > { %s1034_s14 = scalar_select %p105_p4, %s880_s20, %s107_s30  }
  0x25   : > { %s898_s23 = smov 128   ;;  %s1131_s29 = smov 4  }
  0x26   : > { %s1132_s18 = smov 64   ;;  %261 = sbr.rel (%p996_p12) target bundleno = 359 (0x167), region = 40 }
  0x27   : > { %635 = dma.hbm_to_vmem [thread:$0]  (!%p1014_p5), %s242_s1, 512, %s244_s25, %s233_s15, %s898_s23, %s1132_s18, %s1131_s29  }
  0x2b   : > { %855 = dma.done.wait (%p121_p3), [#allocation3], 128  }
  0x2c   : > { %857 = vsyncadd (%p121_p3), [#allocation3], 4294967168 }
  0x2d   : > { %859 = dma.done.wait (%p121_p3), [#allocation6], 256  }
  0x2e   : > { %861 = vsyncadd (%p121_p3), [#allocation6], 4294967040  ;;  %s273_s0 = sand.u32 1, %s963_s24   ;;  %s1052_s1 = sand.u32 1, %s876_s19  }
  0x2f   : > { %s570_s18 = sshll.u32 %s1052_s1, 5  ;;  %s274_s23 = scalar_lea.sflag [#allocation3], %s273_s0 }
  0x30   : > { %s277_s29 = scalar_lea.vmem [#allocation7], %s570_s18 }
  0x31   : > { %863 = dma.done.wait (%p979_p6), %s274_s23, 512  }
  0x32   : > { %865 = vsyncadd (%p979_p6), %s274_s23, 4294966784  ;;  %v608_v0 = vld [vmem:[#allocation5 + $0x8] sm:$0xff]  ;;  %v607_v1 = vld [vmem:[#allocation5] sm:$0xff]  ;;  %vm341_vm0 = vcmask 261120   ;;  %p309_p3 = scmp.lt.s32.totalorder %s884_s21, 1  ;;  %vm398_vm1 = vcmask 523264  }
  0x33   : > { %351 = vmatpush.bf16.msra.mxu0 %v608_v0  ;;  %v606_v2 = vld [vmem:[#allocation2] sm:$0xff]  ;;  %v612_v3 = vld [vmem:[%s277_s29 + $0x18] sm:$0xff]  ;;  %v611_v4 = vld [vmem:[%s277_s29 + $0x10] sm:$0xff]  ;;  %s571_s9 = sshll.u32 %s1052_s1, 4  ;;  %s603_s11 = sshll.u32 %s884_s21, 3 }
  0x34   : > { %s310_s24 = scalar_select %p309_p3, %s884_s21, 1  ;;  %406 = vmatpush.bf16.msra.mxu1 %v612_v3  ;;  %v610_v5 = vld [vmem:[%s277_s29 + $0x8] sm:$0xff]  ;;  %v609_v6 = vld [vmem:[%s277_s29] sm:$0xff] }
  0x35   : > { %v702_v8 = vld [vmem:[%s1108_s2] ss:$0 sm:$0xff]  ;;  %s442_s10 = scalar_lea.hbm %s1111_s5, %s603_s11  ;;  %s307_s12 = scalar_lea.vmem [#allocation8], %s571_s9 }
  0x36   : > { %s311_s16 = scalar_lea.vmem %s1110_s4, %s310_s24  ;;  %s443_s17 = sshll.u32 %s307_s12, 4  ;;  %s444_s17 = int_to_ptr.vmem [resolvable:$true] %s443_s17 }
  0x37   : > { %352 = vmatpush.bf16.msra.mxu0 %v607_v1  ;;  %v703_v15 = vld [vmem:[%s311_s16] ss:$0 sm:$0xff]  ;;  %s445_s13 = sshll.u32 %s442_s10, 4  ;;  %s429_s25 = scalar_lea.sflag [#allocation4], %s1052_s1  ;;  %s446_s13 = int_to_ptr.hbm [resolvable:$true] %s445_s13 }
  0x38   : > { %407 = vmatpush.bf16.msra.mxu1 %v611_v4  ;;  %s816_s0 = sshra.s32 %s446_s13, 4  ;;  %s822_s29 = scalar_lea.hbm %s1111_s5, 32  ;;  %s817_s0 = int_to_ptr.hbm [resolvable:$true] %s816_s0 }
  0x39   : > { %s818_s21 = scalar_lea.hbm %s817_s0, 16  ;;  %p823_p12 = scmp.lt.s32.totalorder %s817_s0, %s1111_s5 }
  0x3a   : > { %584 = vmatmul.msk.bf16.vlgmr.msra.gmra.mxu0 %vm341_vm0, %v606_v2  ;;  %p819_p6 = scmp.ne.s32.totalorder %s817_s0, %s818_s21  ;;  %p824_p13 = scmp.lt.s32.totalorder %s822_s29, %s818_s21 }
  0x3c   : > { %408 = vmatpush.bf16.msra.mxu1 %v610_v5  ;;  %p820_p9 = pnand %p819_p6, %p983_p8  ;;  %p825_p0 = por %p824_p13, %p823_p12 }
  0x3e   : > { %p821_p11 = pneg %p820_p9 }
  0x40   : > { %409 = vmatpush.bf16.msra.mxu1 %v609_v6  ;;  %p826_p2 = pnand %p825_p0, %p821_p11 }
  0xb7   : > { %v354_v7 = vpop.f32.mrf.mxu0 }
  0xb8   : > { %v355_v9 = vadd.f32 %v702_v8, %v354_v7 }
  0xba   : > { %v359_v12 = vmax.f32 %v355_v9, 0.0 }
  0xbf   : > { %v356_v10 = vpop.f32.mrf.mxu0 }
  0xc0   : > { %v357_v11 = vadd.f32 %v702_v8, %v356_v10 }
  0xc2   : > { %v360_v13 = vmax.f32 %v357_v11, 0.0 }
  0xc4   : > { %v361_v14 = vpack.c.bf16 %v360_v13, %v359_v12 }
  0xc6   : > { %601 = vmatmul.msk.bf16.vlgmr.msra.gmra.mxu1 %vm398_vm1, %v361_v14 }
 0x143   : > { %v411_v16 = vpop.f32.mrf.mxu1 }
 0x144   : > { %v412_v17 = vadd.f32 %v703_v15, %v411_v16 }
 0x146   : > { %v416_v18 = vsub.f32 0.0, %v412_v17 }
 0x148   : > { %v418_v19 = vmul.f32 1.442695, %v416_v18 }
 0x14a   : > { %704 = vpow2.f32 %v418_v19 }
 0x14b   : > { %v413_v20 = vpop.f32.mrf.mxu1 }
 0x14c   : > { %v414_v21 = vadd.f32 %v703_v15, %v413_v20 }
 0x14e   : > { %v417_v22 = vsub.f32 0.0, %v414_v21 }
 0x150   : > { %v705_v23 = vpop.eup %704  ;;  %v420_v24 = vmul.f32 1.442695, %v417_v22 }
 0x151   : > { %v422_v25 = vadd.f32 1.0, %v705_v23 }
 0x152   : > { %706 = vpow2.f32 %v420_v24 }
 0x153   : > { %708 = vrcp.f32 %v422_v25 }
 0x158   : > { %v707_v26 = vpop.eup %706 }
 0x159   : > { %v709_v27 = vpop.eup %708  ;;  %v423_v28 = vadd.f32 1.0, %v707_v26 }
 0x15a   : > { %426 = vst [vmem:[%s307_s12] sm:$0xff] %v709_v27 }
 0x15b   : > { %710 = vrcp.f32 %v423_v28 }
 0x161   : > { %v711_v29 = vpop.eup %710 }
 0x162   : > { %427 = vst [vmem:[%s307_s12 + $0x8] sm:$0xff] %v711_v29 }
 0x163   : > { %829 = shalt.err (!%p826_p2)
}
 0x164   : > { %s899_s1 = smov 128   ;;  %s900_s15 = smov 256  }
 0x165   : > { %s901_s16 = smov 8  }
 0x166   : > { %623 = dma.vmem_to_hbm [thread:$0]  (%p983_p8), %s444_s17, 256, %s446_s13, %s429_s25, %s899_s1, %s900_s15, %s901_s16  }
 0x167 PF: > { %s1133_s27 = sld [smem:[#allocation13_spill]]  ;;  %p637_p5 = pnand %p564_p1, %p988_p10 }
 0x168   : > { %s1135_s9 = sld [smem:[#allocation14_spill]] }
 0x169   : > { %p638_p7 = pneg %p637_p5 }
 0x16d   : > { %s460_s11 = sand.u32 1, %s1133_s27  }
 0x16e   : > { %s461_s7 = scalar_lea.sflag [#allocation4], %s460_s11 }
 0x16f   : > { %867 = dma.done.wait (%p638_p7), %s461_s7, 256  }
 0x170   : > { %869 = vsyncadd (%p638_p7), %s461_s7, 4294967040  ;;  %s20_s23 = sadd.s32 1, %s1135_s9   ;;  %s1136_s18 = smov %s876_s19 }
 0x171   : > { %p17_p4 = scmp.ge.s32.totalorder %s20_s23, 4   ;;  %s1137_s19 = smov %s880_s20 }
 0x172   : > { %s1138_s20 = smov %s1034_s14  ;;  %s1139_s21 = smov %s888_s22 }
 0x173   : > { %s1140_s22 = smov %s1142_s6  ;;  %19 = sbr.rel (!%p17_p4) target bundleno = 9 (0x9), region = 96 }
 0x178   :  { %467 = vsyncpa [#allocation3], 1 }
 0x179   :  { %469 = vsyncpa [#allocation3 + $0x1], 1 }
 0x17a   :  { %470 = vsyncpa [#allocation6], 1 }
 0x17b   :  { %471 = vsyncpa [#allocation4], 1 }
 0x17c   :  { %473 = vsyncpa [#allocation4 + $0x1], 1 }

</bundles_post_ra>
